<compile_context>
chip_gen: v6e
topology: v6e:2x2x1
jax: 0.10.0
libtpu: 0.0.40
codegen_flags: <defaults>
</compile_context>

<pallas_src>
import functools

import jax
import jax.numpy as jnp
from jax.experimental import pallas as pl
from jax.experimental.pallas import tpu as pltpu


def _encoder_kernel(x_ref, w1_ref, b1_ref, w2_ref, b2_ref,
                    wh_ref, bh_ref, eps_ref, out_ref, *, z_dim):
    # Linear(x_dim, 512) + ReLU   (bf16 operands, f32 accumulation)
    h1 = jnp.dot(x_ref[...], w1_ref[...],
                 preferred_element_type=jnp.float32) + b1_ref[...]
    h1 = jnp.maximum(h1, 0.0)

    # Linear(512, 512) + ReLU
    h2 = jnp.dot(h1.astype(jnp.bfloat16), w2_ref[...],
                 preferred_element_type=jnp.float32) + b2_ref[...]
    h2 = jnp.maximum(h2, 0.0)

    # Fused gaussian head: one matmul producing [mu | pre_var]
    head = jnp.dot(h2.astype(jnp.bfloat16), wh_ref[...],
                   preferred_element_type=jnp.float32) + bh_ref[...]
    mu = head[:, :z_dim]
    var = jax.nn.softplus(head[:, z_dim:]) + 1e-8
    z = mu + jnp.sqrt(var) * eps_ref[...]

    # Single lane-dense output slab: [mu | var | z]
    out_ref[...] = jnp.concatenate([mu, var, z], axis=-1)


def _round_up(n, m):
    return ((n + m - 1) // m) * m


def encoder_net_forward(x, params, eps, *, block_b=256):
    """x: (B, x_dim) f32; params: dict of f32 weights; eps: (B, z_dim) f32."""
    B, x_dim = x.shape
    hidden = params["w1"].shape[1]
    z_dim = params["wmu"].shape[1]

    # bf16 matmul operands (halves weight DMA, native bf16 MXU on v6e/v7x);
    # biases stay f32 so all post-matmul elementwise math runs in f32.
    w1 = params["w1"].astype(jnp.bfloat16)
    w2 = params["w2"].astype(jnp.bfloat16)
    w_head = jnp.concatenate([params["wmu"], params["wvar"]],
                             axis=1).astype(jnp.bfloat16)
    b1 = params["b1"].astype(jnp.float32)
    b2 = params["b2"].astype(jnp.float32)
    b_head = jnp.concatenate([params["bmu"], params["bvar"]],
                             axis=1).astype(jnp.float32)

    # Batch tiling: weights stay VMEM-resident (constant index_maps),
    # activations / eps / outputs stream per batch tile.
    tb = min(block_b, _round_up(B, 8))
    padded_b = _round_up(B, tb)
    if padded_b != B:
        pad = padded_b - B
        x = jnp.pad(x, ((0, pad), (0, 0)))
        eps = jnp.pad(eps, ((0, pad), (0, 0)))
    x_bf = x.astype(jnp.bfloat16)
    eps = eps.astype(jnp.float32)
    grid = (padded_b // tb,)

    const = lambda i: (0, 0)   # weights / biases: same block every grid step
    row = lambda i: (i, 0)     # activations / eps / output: tiled over batch

    flops = 2 * padded_b * (x_dim * hidden + hidden * hidden
                            + hidden * 2 * z_dim)
    bytes_accessed = (x_bf.size * 2 + eps.size * 4
                      + w1.size * 2 + w2.size * 2 + w_head.size * 2
                      + (b1.size + b2.size + b_head.size) * 4
                      + padded_b * 3 * z_dim * 4)

    out = pl.pallas_call(
        functools.partial(_encoder_kernel, z_dim=z_dim),
        out_shape=jax.ShapeDtypeStruct((padded_b, 3 * z_dim), jnp.float32),
        grid_spec=pltpu.PrefetchScalarGridSpec(
            num_scalar_prefetch=0,
            grid=grid,
            in_specs=[
                pl.BlockSpec((tb, x_dim), row),          # x
                pl.BlockSpec((x_dim, hidden), const),    # W1
                pl.BlockSpec((1, hidden), const),        # b1
                pl.BlockSpec((hidden, hidden), const),   # W2
                pl.BlockSpec((1, hidden), const),        # b2
                pl.BlockSpec((hidden, 2 * z_dim), const),  # W_head = [Wmu|Wvar]
                pl.BlockSpec((1, 2 * z_dim), const),       # b_head
                pl.BlockSpec((tb, z_dim), row),          # eps
            ],
            out_specs=pl.BlockSpec((tb, 3 * z_dim), row),
        ),
        compiler_params=pltpu.CompilerParams(
            dimension_semantics=("parallel",)),
        cost_estimate=pl.CostEstimate(
            flops=flops,
            transcendentals=padded_b * z_dim,   # softplus exp/log
            bytes_accessed=bytes_accessed),
    )(x_bf, w1, b1, w2, b2, w_head, b_head, eps)

    mu = out[:B, :z_dim]
    var = out[:B, z_dim:2 * z_dim]
    z = out[:B, 2 * z_dim:]
    return {"muZ_x": mu, "varZ_x": var, "z_x": z}


def init_params(key, x_dim, z_dim, hidden=512):
    ks = jax.random.split(key, 8)

    def lin(kw, kb, fan_in, fan_out):
        # deterministic, PyTorch-Linear-like uniform init
        bound = 1.0 / jnp.sqrt(fan_in)
        w = jax.random.uniform(kw, (fan_in, fan_out), jnp.float32, -bound, bound)
        b = jax.random.uniform(kb, (1, fan_out), jnp.float32, -bound, bound)
        return w, b

    w1, b1 = lin(ks[0], ks[1], x_dim, hidden)
    w2, b2 = lin(ks[2], ks[3], hidden, hidden)
    wmu, bmu = lin(ks[4], ks[5], hidden, z_dim)
    wvar, bvar = lin(ks[6], ks[7], hidden, z_dim)
    return {"w1": w1, "b1": b1, "w2": w2, "b2": b2,
            "wmu": wmu, "bmu": bmu, "wvar": wvar, "bvar": bvar}


def _reference(x, p, eps):
    # Pure f32 reference for the mathematical spec.
    h1 = jnp.maximum(x @ p["w1"] + p["b1"], 0.0)
    h2 = jnp.maximum(h1 @ p["w2"] + p["b2"], 0.0)
    mu = h2 @ p["wmu"] + p["bmu"]
    var = jax.nn.softplus(h2 @ p["wvar"] + p["bvar"]) + 1e-8
    z = mu + jnp.sqrt(var) * eps
    return mu, var, z


if __name__ == "__main__":
    key = jax.random.PRNGKey(0)
    k_x, k_p, k_eps = jax.random.split(key, 3)

    B, x_dim, z_dim = 8, 64, 32
    x = jax.random.normal(k_x, (B, x_dim), jnp.float32)
    params = init_params(k_p, x_dim, z_dim)
    eps = jax.random.normal(k_eps, (B, z_dim), jnp.float32)

    out = encoder_net_forward(x, params, eps)
    jax.block_until_ready(out)

    mu_ref, var_ref, z_ref = _reference(x, params, eps)
    # Kernel uses bf16 matmul operands (f32 accumulation) -> looser tolerance
    # against the pure-f32 reference.
    assert jnp.allclose(out["muZ_x"], mu_ref, atol=2e-2, rtol=2e-2)
    assert jnp.allclose(out["varZ_x"], var_ref, atol=2e-2, rtol=2e-2)
    assert jnp.allclose(out["z_x"], z_ref, atol=2e-2, rtol=2e-2)

    print("KERNEL_OK")
</pallas_src>

<mosaic_0001>
module attributes {stable_mosaic.version = 11 : i64} {
  func.func @_encoder_kernel(%arg0: i32, %arg1: memref<8x64xbf16, #tpu.memory_space<vmem>>, %arg2: memref<64x512xbf16, #tpu.memory_space<vmem>>, %arg3: memref<1x512xf32, #tpu.memory_space<vmem>>, %arg4: memref<512x512xbf16, #tpu.memory_space<vmem>>, %arg5: memref<1x512xf32, #tpu.memory_space<vmem>>, %arg6: memref<512x64xbf16, #tpu.memory_space<vmem>>, %arg7: memref<1x64xf32, #tpu.memory_space<vmem>>, %arg8: memref<8x32xf32, #tpu.memory_space<vmem>>, %arg9: memref<8x96xf32, #tpu.memory_space<vmem>>) attributes {dimension_semantics = [#tpu.dimension_semantics<parallel>], iteration_bounds = array<i64: 1>, scalar_prefetch = 0 : i64, scratch_operands = 0 : i64, tpu.core_type = #tpu.core_type<tc>, window_params = [{transform_indices = @transform_0, window_bounds = array<i64: 8, 64>}, {pipeline_mode = #tpu.pipeline_mode<synchronous>, transform_indices = @transform_1, window_bounds = array<i64: 64, 512>}, {pipeline_mode = #tpu.pipeline_mode<synchronous>, transform_indices = @transform_2, window_bounds = array<i64: 1, 512>}, {pipeline_mode = #tpu.pipeline_mode<synchronous>, transform_indices = @transform_3, window_bounds = array<i64: 512, 512>}, {pipeline_mode = #tpu.pipeline_mode<synchronous>, transform_indices = @transform_4, window_bounds = array<i64: 1, 512>}, {pipeline_mode = #tpu.pipeline_mode<synchronous>, transform_indices = @transform_5, window_bounds = array<i64: 512, 64>}, {pipeline_mode = #tpu.pipeline_mode<synchronous>, transform_indices = @transform_6, window_bounds = array<i64: 1, 64>}, {transform_indices = @transform_7, window_bounds = array<i64: 8, 32>}, {transform_indices = @transform_8, window_bounds = array<i64: 8, 96>}]} {
    %c0 = arith.constant 0 : index
    %c0_0 = arith.constant 0 : index
    %0 = vector.load %arg1[%c0, %c0_0] : memref<8x64xbf16, #tpu.memory_space<vmem>>, vector<8x64xbf16>
    %c0_1 = arith.constant 0 : index
    %c0_2 = arith.constant 0 : index
    %1 = vector.load %arg2[%c0_1, %c0_2] : memref<64x512xbf16, #tpu.memory_space<vmem>>, vector<64x512xbf16>
    %cst = arith.constant dense<0.000000e+00> : vector<8x512xf32>
    %2 = tpu.matmul %0, %1, %cst {dimension_numbers = #tpu.dot_dimension_numbers<[1], [0], [0], [1], [0, 0, 1, 1], [], []>} : vector<8x64xbf16>, vector<64x512xbf16>, vector<8x512xf32> -> vector<8x512xf32>
    %c0_3 = arith.constant 0 : index
    %c0_4 = arith.constant 0 : index
    %3 = vector.load %arg3[%c0_3, %c0_4] : memref<1x512xf32, #tpu.memory_space<vmem>>, vector<1x512xf32>
    %4 = vector.broadcast %3 : vector<1x512xf32> to vector<8x512xf32>
    %5 = arith.addf %2, %4 : vector<8x512xf32>
    %cst_5 = arith.constant 0.000000e+00 : f32
    %6 = vector.broadcast %cst_5 : f32 to vector<8x512xf32>
    %7 = arith.maximumf %5, %6 : vector<8x512xf32>
    %8 = arith.truncf %7 : vector<8x512xf32> to vector<8x512xbf16>
    %c0_6 = arith.constant 0 : index
    %c0_7 = arith.constant 0 : index
    %9 = vector.load %arg4[%c0_6, %c0_7] : memref<512x512xbf16, #tpu.memory_space<vmem>>, vector<512x512xbf16>
    %cst_8 = arith.constant dense<0.000000e+00> : vector<8x512xf32>
    %10 = tpu.matmul %8, %9, %cst_8 {dimension_numbers = #tpu.dot_dimension_numbers<[1], [0], [0], [1], [0, 0, 1, 1], [], []>} : vector<8x512xbf16>, vector<512x512xbf16>, vector<8x512xf32> -> vector<8x512xf32>
    %c0_9 = arith.constant 0 : index
    %c0_10 = arith.constant 0 : index
    %11 = vector.load %arg5[%c0_9, %c0_10] : memref<1x512xf32, #tpu.memory_space<vmem>>, vector<1x512xf32>
    %12 = vector.broadcast %11 : vector<1x512xf32> to vector<8x512xf32>
    %13 = arith.addf %10, %12 : vector<8x512xf32>
    %cst_11 = arith.constant 0.000000e+00 : f32
    %14 = vector.broadcast %cst_11 : f32 to vector<8x512xf32>
    %15 = arith.maximumf %13, %14 : vector<8x512xf32>
    %16 = arith.truncf %15 : vector<8x512xf32> to vector<8x512xbf16>
    %c0_12 = arith.constant 0 : index
    %c0_13 = arith.constant 0 : index
    %17 = vector.load %arg6[%c0_12, %c0_13] : memref<512x64xbf16, #tpu.memory_space<vmem>>, vector<512x64xbf16>
    %cst_14 = arith.constant dense<0.000000e+00> : vector<8x64xf32>
    %18 = tpu.matmul %16, %17, %cst_14 {dimension_numbers = #tpu.dot_dimension_numbers<[1], [0], [0], [1], [0, 0, 1, 1], [], []>} : vector<8x512xbf16>, vector<512x64xbf16>, vector<8x64xf32> -> vector<8x64xf32>
    %c0_15 = arith.constant 0 : index
    %c0_16 = arith.constant 0 : index
    %19 = vector.load %arg7[%c0_15, %c0_16] : memref<1x64xf32, #tpu.memory_space<vmem>>, vector<1x64xf32>
    %20 = vector.broadcast %19 : vector<1x64xf32> to vector<8x64xf32>
    %21 = arith.addf %18, %20 : vector<8x64xf32>
    %22 = vector.extract_strided_slice %21 {offsets = [0, 0], sizes = [8, 32], strides = [1, 1]} : vector<8x64xf32> to vector<8x32xf32>
    %23 = vector.extract_strided_slice %21 {offsets = [0, 32], sizes = [8, 32], strides = [1, 1]} : vector<8x64xf32> to vector<8x32xf32>
    %cst_17 = arith.constant 0.000000e+00 : f32
    %24 = vector.broadcast %cst_17 : f32 to vector<8x32xf32>
    %25 = arith.maximumf %23, %24 : vector<8x32xf32>
    %26 = vector.broadcast %cst_17 : f32 to vector<8x32xf32>
    %27 = arith.subf %23, %26 : vector<8x32xf32>
    %28 = arith.cmpf one, %27, %27 : vector<8x32xf32>
    %29 = vector.broadcast %cst_17 : f32 to vector<8x32xf32>
    %30 = arith.addf %23, %29 : vector<8x32xf32>
    %31 = math.absf %27 : vector<8x32xf32>
    %cst_18 = arith.constant 0.000000e+00 : f32
    %32 = vector.broadcast %cst_18 : f32 to vector<8x32xf32>
    %33 = arith.subf %32, %31 : vector<8x32xf32>
    %34 = math.exp %33 : vector<8x32xf32>
    %35 = math.log1p %34 : vector<8x32xf32>
    %36 = arith.addf %25, %35 : vector<8x32xf32>
    %37 = arith.select %28, %30, %36 : vector<8x32xi1>, vector<8x32xf32>
    %cst_19 = arith.constant 9.99999993E-9 : f32
    %38 = vector.broadcast %cst_19 : f32 to vector<8x32xf32>
    %39 = arith.addf %37, %38 : vector<8x32xf32>
    %40 = math.sqrt %39 : vector<8x32xf32>
    %c0_20 = arith.constant 0 : index
    %c0_21 = arith.constant 0 : index
    %41 = vector.load %arg8[%c0_20, %c0_21] : memref<8x32xf32, #tpu.memory_space<vmem>>, vector<8x32xf32>
    %42 = arith.mulf %40, %41 : vector<8x32xf32>
    %43 = arith.addf %22, %42 : vector<8x32xf32>
    %44 = tpu.concatenate %22, %39, %43 in 1 : vector<8x32xf32>, vector<8x32xf32>, vector<8x32xf32> -> vector<8x96xf32>
    %c0_22 = arith.constant 0 : index
    %c0_23 = arith.constant 0 : index
    %45 = vector.load %arg9[%c0_22, %c0_23] : memref<8x96xf32, #tpu.memory_space<vmem>>, vector<8x96xf32>
    tpu.vector_store %arg9[%c0_22, %c0_23], %44 {strides = array<i32>} : memref<8x96xf32, #tpu.memory_space<vmem>>, vector<8x96xf32>,
    return
  }
  func.func @transform_0(%arg0: i32) -> (i32, i32) {
    %c0_i32 = arith.constant 0 : i32
    %c0_i32_0 = arith.constant 0 : i32
    return %arg0, %c0_i32 : i32, i32
  }
  func.func @transform_1(%arg0: i32) -> (i32, i32) {
    %c0_i32 = arith.constant 0 : i32
    %c0_i32_0 = arith.constant 0 : i32
    %c0_i32_1 = arith.constant 0 : i32
    return %c0_i32, %c0_i32_0 : i32, i32
  }
  func.func @transform_2(%arg0: i32) -> (i32, i32) {
    %c0_i32 = arith.constant 0 : i32
    %c0_i32_0 = arith.constant 0 : i32
    %c0_i32_1 = arith.constant 0 : i32
    return %c0_i32, %c0_i32_0 : i32, i32
  }
  func.func @transform_3(%arg0: i32) -> (i32, i32) {
    %c0_i32 = arith.constant 0 : i32
    %c0_i32_0 = arith.constant 0 : i32
    %c0_i32_1 = arith.constant 0 : i32
    return %c0_i32, %c0_i32_0 : i32, i32
  }
  func.func @transform_4(%arg0: i32) -> (i32, i32) {
    %c0_i32 = arith.constant 0 : i32
    %c0_i32_0 = arith.constant 0 : i32
    %c0_i32_1 = arith.constant 0 : i32
    return %c0_i32, %c0_i32_0 : i32, i32
  }
  func.func @transform_5(%arg0: i32) -> (i32, i32) {
    %c0_i32 = arith.constant 0 : i32
    %c0_i32_0 = arith.constant 0 : i32
    %c0_i32_1 = arith.constant 0 : i32
    return %c0_i32, %c0_i32_0 : i32, i32
  }
  func.func @transform_6(%arg0: i32) -> (i32, i32) {
    %c0_i32 = arith.constant 0 : i32
    %c0_i32_0 = arith.constant 0 : i32
    %c0_i32_1 = arith.constant 0 : i32
    return %c0_i32, %c0_i32_0 : i32, i32
  }
  func.func @transform_7(%arg0: i32) -> (i32, i32) {
    %c0_i32 = arith.constant 0 : i32
    %c0_i32_0 = arith.constant 0 : i32
    return %arg0, %c0_i32 : i32, i32
  }
  func.func @transform_8(%arg0: i32) -> (i32, i32) {
    %c0_i32 = arith.constant 0 : i32
    %c0_i32_0 = arith.constant 0 : i32
    return %arg0, %c0_i32 : i32, i32
  }
}

</mosaic_0001>

<bundles_post_ra>
// kernel: tpu_custom_call.1
= control target key start
LH: loop header
LB: loop body
LE: loop exit
PB: predicated region body
PF: predicated region fallthrough
CT: control target
= control target key end

     0   :  { %13 = vsyncpa [#allocation3], 0  ;;  %s2404_s0 = inlined_call_operand.vmem [shape: bf16[8,64], index: 0, kind: input, shape index: {}]   ;;  %s2405_s1 = inlined_call_operand.vmem [shape: bf16[64,512], index: 1, kind: input, shape index: {}]   ;;  %s2406_s2 = inlined_call_operand.vmem [shape: f32[1,512], index: 2, kind: input, shape index: {}]   ;;  %s2407_s3 = inlined_call_operand.hbm [shape: bf16[512,512], index: 3, kind: input, shape index: {}]   ;;  %s2408_s4 = inlined_call_operand.vmem [shape: f32[1,512], index: 4, kind: input, shape index: {}]   ;;  %s2409_s5 = inlined_call_operand.vmem [shape: bf16[512,64], index: 5, kind: input, shape index: {}]   ;;  %s2410_s6 = inlined_call_operand.vmem [shape: f32[1,64], index: 6, kind: input, shape index: {}]   ;;  %s2411_s7 = inlined_call_operand.vmem [shape: f32[8,32], index: 7, kind: input, shape index: {}]   ;;  %s2412_s8 = inlined_call_operand.hbm [shape: f32[8,96], index: 8, kind: output, shape index: {}]  }
   0x1   :  { %14 = vsyncpa [#allocation4], 0  ;;  %s2153_s27 = smov [#allocation2]  }
   0x2   :  { %s26_s28 = sshll.u32 %s2153_s27, 4  ;;  %s27_s28 = int_to_ptr.vmem [resolvable:$true] %s26_s28 }
   0x3   :  { %s2117_s29 = scalar_lea.vmem %s27_s28, 16384  ;;  %p2122_p1 = scmp.lt.s32.totalorder %s27_s28, %s27_s28 }
   0x4   :  { %p2118_p0 = scmp.ne.s32.totalorder %s27_s28, %s2117_s29  ;;  %p2123_p2 = scmp.lt.s32.totalorder %s2117_s29, %s2117_s29 }
   0x6   :  { %p2124_p3 = por %p2123_p2, %p2122_p1 }
   0x8   :  { %p2125_p4 = pnand %p2124_p3, %p2118_p0 }
   0xa   :  { %2128 = shalt.err (!%p2125_p4)
}
   0xb   :  { %s2154_s30 = smov 256   ;;  %s2155_s9 = smov 16  }
   0xc   :  { %32 = dma.hbm_to_vmem [thread:$0]  %s2407_s3, 16384, %s27_s28, [#allocation3], %s2154_s30, %s2154_s30, %s2155_s9  }
   0xd   :  { %2149 = dma.done.wait [#allocation3], 16384  }
   0xe   :  { %2150 = vsyncadd [#allocation3], 4294950912  ;;  %v2156_v0 = vmov 0   ;;  %v1855_v1 = vld [vmem:[%s2405_s1 + $0x64] ss:$16 sps:$4 sm:$0xff]   ;;  %vm164_vm0 = vcmask 523264  }
   0xf   :  { %200 = vmatprep.mubr.bf16.mxu0 %v2156_v0  ;;  %241 = vmatprep.mubr.bf16.mxu1 %v2156_v0  ;;  %v1857_v2 = vld [vmem:[%s2405_s1 + $0x6c] ss:$16 sps:$4 sm:$0xff]   ;;  %v1859_v3 = vld [vmem:[%s2405_s1 + $0x60] ss:$16 sps:$4 sm:$0xff]   ;;  %v1860_v4 = vld [vmem:[%s2405_s1 + $0x68] ss:$16 sps:$4 sm:$0xff]  }
  0x10   :  { %176 = vmatprep.subr.bf16.mxu0 %v1855_v1  ;;  %217 = vmatprep.subr.bf16.mxu1 %v1857_v2  ;;  %v1861_v5 = vld [vmem:[%s2405_s1 + $0x44] ss:$16 sps:$4 sm:$0xff]   ;;  %v1863_v6 = vld [vmem:[%s2405_s1 + $0x4c] ss:$16 sps:$4 sm:$0xff]   ;;  %v1865_v7 = vld [vmem:[%s2405_s1 + $0x40] ss:$16 sps:$4 sm:$0xff]  }
  0x11   :  { %177 = vmatpush1.bf16.msra.mxu0 %v1859_v3  ;;  %218 = vmatpush1.bf16.msra.mxu1 %v1860_v4  ;;  %v1866_v8 = vld [vmem:[%s2405_s1 + $0x48] ss:$16 sps:$4 sm:$0xff]   ;;  %v1867_v9 = vld [vmem:[%s2405_s1 + $0x24] ss:$16 sps:$4 sm:$0xff]   ;;  %v1869_v10 = vld [vmem:[%s2405_s1 + $0x2c] ss:$16 sps:$4 sm:$0xff]  }
  0x12   :  { %178 = vmatprep.subr.bf16.mxu0 %v1861_v5  ;;  %219 = vmatprep.subr.bf16.mxu1 %v1863_v6  ;;  %v1871_v11 = vld [vmem:[%s2405_s1 + $0x20] ss:$16 sps:$4 sm:$0xff]   ;;  %v1872_v12 = vld [vmem:[%s2405_s1 + $0x28] ss:$16 sps:$4 sm:$0xff]   ;;  %v1873_v13 = vld [vmem:[%s2405_s1 + $0x4] ss:$16 sps:$4 sm:$0xff]  }
  0x13   :  { %v1875_v14 = vld [vmem:[%s2405_s1 + $0xc] ss:$16 sps:$4 sm:$0xff]   ;;  %v1877_v15 = vld [vmem:[%s2405_s1] ss:$16 sps:$4 sm:$0xff]   ;;  %v1878_v16 = vld [vmem:[%s2405_s1 + $0x8] ss:$16 sps:$4 sm:$0xff]  }
  0x14   :  { %v1881_v17 = vld [vmem:[#allocation2 + $0xe4] ss:$16 sps:$4 sm:$0xff]   ;;  %v45_v19 = vld [vmem:[%s2404_s0] sm:$0xf]  ;;  %s2157_s13 = smov 32   ;;  %vm1604_vm5 = vcmask 261120  }
  0x15   :  { %179 = vmatpush1.bf16.msra.mxu0 %v1865_v7  ;;  %220 = vmatpush1.bf16.msra.mxu1 %v1866_v8  ;;  %v1884_v18 = vld [vmem:[#allocation2 + $0x2e4] ss:$16 sps:$4 sm:$0xff]   ;;  %v1879_v20 = vld [vmem:[#allocation2 + $0xe0] ss:$16 sps:$4 sm:$0xff]   ;;  %s2160_s16 = smov [#allocation5]   ;;  %vm1607_vm6 = vcmask 785408  }
  0x16   :  { %180 = vmatprep.subr.bf16.mxu0 %v1867_v9  ;;  %221 = vmatprep.subr.bf16.mxu1 %v1869_v10  ;;  %v1882_v21 = vld [vmem:[#allocation2 + $0x2e0] ss:$16 sps:$4 sm:$0xff]   ;;  %v1887_v22 = vld [vmem:[#allocation2 + $0xc4] ss:$16 sps:$4 sm:$0xff]   ;;  %s1615_s17 = sshll.u32 %s2160_s16, 4  ;;  %s1616_s17 = int_to_ptr.vmem [resolvable:$true] %s1615_s17 }
  0x17   :  { %v1890_v23 = vld [vmem:[#allocation2 + $0x2c4] ss:$16 sps:$4 sm:$0xff]   ;;  %v1885_v24 = vld [vmem:[#allocation2 + $0xc0] ss:$16 sps:$4 sm:$0xff]   ;;  %s2129_s18 = scalar_lea.vmem %s1616_s17, 128  ;;  %p2134_p6 = scmp.lt.s32.totalorder %s1616_s17, %s1616_s17 }
  0x18   :  { %v1888_v25 = vld [vmem:[#allocation2 + $0x2c0] ss:$16 sps:$4 sm:$0xff]   ;;  %v1893_v26 = vld [vmem:[#allocation2 + $0xa4] ss:$16 sps:$4 sm:$0xff]   ;;  %p2130_p5 = scmp.ne.s32.totalorder %s1616_s17, %s2129_s18  ;;  %p2135_p7 = scmp.lt.s32.totalorder %s2129_s18, %s2129_s18 }
  0x19   :  { %181 = vmatpush1.bf16.msra.mxu0 %v1871_v11  ;;  %222 = vmatpush1.bf16.msra.mxu1 %v1872_v12  ;;  %v1896_v27 = vld [vmem:[#allocation2 + $0x2a4] ss:$16 sps:$4 sm:$0xff]   ;;  %v1891_v28 = vld [vmem:[#allocation2 + $0xa0] ss:$16 sps:$4 sm:$0xff]  }
  0x1a   :  { %182 = vmatprep.subr.bf16.mxu0 %v1873_v13  ;;  %223 = vmatprep.subr.bf16.mxu1 %v1875_v14  ;;  %v1894_v29 = vld [vmem:[#allocation2 + $0x2a0] ss:$16 sps:$4 sm:$0xff]   ;;  %v1899_v30 = vld [vmem:[#allocation2 + $0x84] ss:$16 sps:$4 sm:$0xff]   ;;  %p2136_p8 = por %p2135_p7, %p2134_p6 }
  0x1b   :  { %v1902_v31 = vld [vmem:[#allocation2 + $0x284] ss:$16 sps:$4 sm:$0xff]   ;;  %v1897_v32 = vld [vmem:[#allocation2 + $0x80] ss:$16 sps:$4 sm:$0xff]  }
  0x1c   :  { %v1900_v33 = vld [vmem:[#allocation2 + $0x280] ss:$16 sps:$4 sm:$0xff]   ;;  %v1905_v34 = vld [vmem:[#allocation2 + $0x64] ss:$16 sps:$4 sm:$0xff]   ;;  %p2137_p9 = pnand %p2136_p8, %p2130_p5 }
  0x1d   :  { %183 = vmatpush1.bf16.msra.mxu0 %v1877_v15  ;;  %224 = vmatpush1.bf16.msra.mxu1 %v1878_v16  ;;  %v1908_v35 = vld [vmem:[#allocation2 + $0x264] ss:$16 sps:$4 sm:$0xff]   ;;  %v1903_v36 = vld [vmem:[#allocation2 + $0x60] ss:$16 sps:$4 sm:$0xff]  }
  0x1e   :  { %1048 = vmatprep.subr.bf16.mxu0 %v1881_v17  ;;  %1089 = vmatprep.subr.bf16.mxu1 %v1884_v18  ;;  %v1906_v37 = vld [vmem:[#allocation2 + $0x260] ss:$16 sps:$4 sm:$0xff]   ;;  %v1911_v38 = vld [vmem:[#allocation2 + $0x44] ss:$16 sps:$4 sm:$0xff]   ;;  %v1977_v18 = vld [vmem:[#allocation2 + $0xec] ss:$16 sps:$4 sm:$0xff]  }
  0x1f   :  { %v1914_v39 = vld [vmem:[#allocation2 + $0x244] ss:$16 sps:$4 sm:$0xff]   ;;  %v1909_v40 = vld [vmem:[#allocation2 + $0x40] ss:$16 sps:$4 sm:$0xff]  }
  0x20   :  { %1640 = vmatmul.mubr.msk.bf16.vlgmr.msra.gmra.mxu0 %vm164_vm0, %v45_v19  ;;  %1641 = vmatmul.mubr.msk.bf16.vlgmr.msra.gmra.mxu1 %vm164_vm0, %v45_v19  ;;  %v1912_v41 = vld [vmem:[#allocation2 + $0x240] ss:$16 sps:$4 sm:$0xff]   ;;  %v1917_v42 = vld [vmem:[#allocation2 + $0x24] ss:$16 sps:$4 sm:$0xff]   ;;  %v1980_v19 = vld [vmem:[#allocation2 + $0x2ec] ss:$16 sps:$4 sm:$0xff]  }
  0x21   :  { %1049 = vmatpush1.bf16.msra.mxu0 %v1879_v20  ;;  %1090 = vmatpush1.bf16.msra.mxu1 %v1882_v21  ;;  %v1920_v43 = vld [vmem:[#allocation2 + $0x224] ss:$16 sps:$4 sm:$0xff]   ;;  %v1915_v44 = vld [vmem:[#allocation2 + $0x20] ss:$16 sps:$4 sm:$0xff]   ;;  %v64_v20 = vlaneseq }
  0x22   :  { %1050 = vmatprep.subr.bf16.mxu0 %v1887_v22  ;;  %1091 = vmatprep.subr.bf16.mxu1 %v1890_v23  ;;  %v1918_v45 = vld [vmem:[#allocation2 + $0x220] ss:$16 sps:$4 sm:$0xff]   ;;  %v1923_v46 = vld [vmem:[#allocation2 + $0x4] ss:$16 sps:$4 sm:$0xff]  }
  0x23   :  { %v1926_v47 = vld [vmem:[#allocation2 + $0x204] ss:$16 sps:$4 sm:$0xff]   ;;  %v1921_v48 = vld [vmem:[#allocation2] ss:$16 sps:$4 sm:$0xff]   ;;  %v2262_v21 = vshrl.u32 %v64_v20, 7 }
  0x24   :  { %v1924_v49 = vld [vmem:[#allocation2 + $0x200] ss:$16 sps:$4 sm:$0xff]   ;;  %v1929_v50 = vld [vmem:[#allocation2 + $0x1e4] ss:$16 sps:$4 sm:$0xff]   ;;  %v2026_v20 = vld [vmem:[#allocation2 + $0x3e8] ss:$16 sps:$4 sm:$0xff]  }
  0x25   :  { %1051 = vmatpush1.bf16.msra.mxu0 %v1885_v24  ;;  %1092 = vmatpush1.bf16.msra.mxu1 %v1888_v25  ;;  %v1932_v51 = vld [vmem:[#allocation2 + $0x3e4] ss:$16 sps:$4 sm:$0xff]   ;;  %v1927_v52 = vld [vmem:[#allocation2 + $0x1e0] ss:$16 sps:$4 sm:$0xff]   ;;  %v66_v22 = vsub.s32 0, %v2262_v21  ;;  %v74_v23 = vsub.s32 2, %v2262_v21 }
  0x26   :  { %1052 = vmatprep.subr.bf16.mxu0 %v1893_v26  ;;  %1093 = vmatprep.subr.bf16.mxu1 %v1896_v27  ;;  %v1930_v53 = vld [vmem:[#allocation2 + $0x3e0] ss:$16 sps:$4 sm:$0xff]   ;;  %v1935_v54 = vld [vmem:[#allocation2 + $0x1c4] ss:$16 sps:$4 sm:$0xff]   ;;  %v70_v25 = vsub.s32 1, %v2262_v21  ;;  %v78_v26 = vsub.s32 3, %v2262_v21 }
  0x27   :  { %v1938_v55 = vld [vmem:[#allocation2 + $0x3c4] ss:$16 sps:$4 sm:$0xff]   ;;  %v1933_v56 = vld [vmem:[#allocation2 + $0x1c0] ss:$16 sps:$4 sm:$0xff]  }
  0x28   :  { %v1936_v57 = vld [vmem:[#allocation2 + $0x3c0] ss:$16 sps:$4 sm:$0xff]   ;;  %v1941_v58 = vld [vmem:[#allocation2 + $0x1a4] ss:$16 sps:$4 sm:$0xff]  }
  0x29   :  { %1053 = vmatpush1.bf16.msra.mxu0 %v1891_v28  ;;  %1094 = vmatpush1.bf16.msra.mxu1 %v1894_v29  ;;  %v1944_v59 = vld [vmem:[#allocation2 + $0x3a4] ss:$16 sps:$4 sm:$0xff]   ;;  %v1939_v60 = vld [vmem:[#allocation2 + $0x1a0] ss:$16 sps:$4 sm:$0xff]  }
  0x2a   :  { %1054 = vmatprep.subr.bf16.mxu0 %v1899_v30  ;;  %1095 = vmatprep.subr.bf16.mxu1 %v1902_v31  ;;  %v1942_v61 = vld [vmem:[#allocation2 + $0x3a0] ss:$16 sps:$4 sm:$0xff]   ;;  %v1947_v62 = vld [vmem:[#allocation2 + $0x184] ss:$16 sps:$4 sm:$0xff]  }
  0x2b   :  { %v1950_v63 = vld [vmem:[#allocation2 + $0x384] ss:$16 sps:$4 sm:$0xff]   ;;  %v1945_v0 = vld [vmem:[#allocation2 + $0x180] ss:$16 sps:$4 sm:$0xff]  }
  0x2c   :  { %v1948_v1 = vld [vmem:[#allocation2 + $0x380] ss:$16 sps:$4 sm:$0xff]   ;;  %v1953_v2 = vld [vmem:[#allocation2 + $0x164] ss:$16 sps:$4 sm:$0xff]  }
  0x2d   :  { %1055 = vmatpush1.bf16.msra.mxu0 %v1897_v32  ;;  %1096 = vmatpush1.bf16.msra.mxu1 %v1900_v33  ;;  %v1956_v3 = vld [vmem:[#allocation2 + $0x364] ss:$16 sps:$4 sm:$0xff]   ;;  %v1951_v4 = vld [vmem:[#allocation2 + $0x160] ss:$16 sps:$4 sm:$0xff]  }
  0x2e   :  { %1056 = vmatprep.subr.bf16.mxu0 %v1905_v34  ;;  %1097 = vmatprep.subr.bf16.mxu1 %v1908_v35  ;;  %v1954_v5 = vld [vmem:[#allocation2 + $0x360] ss:$16 sps:$4 sm:$0xff]   ;;  %v1959_v6 = vld [vmem:[#allocation2 + $0x144] ss:$16 sps:$4 sm:$0xff]  }
  0x2f   :  { %v1962_v7 = vld [vmem:[#allocation2 + $0x344] ss:$16 sps:$4 sm:$0xff]   ;;  %v1957_v8 = vld [vmem:[#allocation2 + $0x140] ss:$16 sps:$4 sm:$0xff]  }
  0x30   :  { %v1960_v9 = vld [vmem:[#allocation2 + $0x340] ss:$16 sps:$4 sm:$0xff]   ;;  %v1965_v10 = vld [vmem:[#allocation2 + $0x124] ss:$16 sps:$4 sm:$0xff]  }
  0x31   :  { %1057 = vmatpush1.bf16.msra.mxu0 %v1903_v36  ;;  %1098 = vmatpush1.bf16.msra.mxu1 %v1906_v37  ;;  %v1968_v11 = vld [vmem:[#allocation2 + $0x324] ss:$16 sps:$4 sm:$0xff]   ;;  %v1963_v12 = vld [vmem:[#allocation2 + $0x120] ss:$16 sps:$4 sm:$0xff]  }
  0x32   :  { %1058 = vmatprep.subr.bf16.mxu0 %v1911_v38  ;;  %1099 = vmatprep.subr.bf16.mxu1 %v1914_v39  ;;  %v1966_v13 = vld [vmem:[#allocation2 + $0x320] ss:$16 sps:$4 sm:$0xff]   ;;  %v1971_v14 = vld [vmem:[#allocation2 + $0x104] ss:$16 sps:$4 sm:$0xff]  }
  0x33   :  { %v1974_v15 = vld [vmem:[#allocation2 + $0x304] ss:$16 sps:$4 sm:$0xff]   ;;  %v1969_v16 = vld [vmem:[#allocation2 + $0x100] ss:$16 sps:$4 sm:$0xff]  }
  0x34   :  { %v1972_v17 = vld [vmem:[#allocation2 + $0x300] ss:$16 sps:$4 sm:$0xff]  }
  0x35   :  { %1059 = vmatpush1.bf16.msra.mxu0 %v1909_v40  ;;  %1100 = vmatpush1.bf16.msra.mxu1 %v1912_v41  ;;  %v62_v24 = vld [vmem:[%s2406_s2] sm:$0xf] }
  0x36   :  { %1060 = vmatprep.subr.bf16.mxu0 %v1917_v42  ;;  %1101 = vmatprep.subr.bf16.mxu1 %v1920_v43  ;;  %v67_v27 = vrot.slane %v62_v24, %v66_v22  ;;  %v75_v28 = vrot.slane %v62_v24, %v74_v23  ;;  %v71_v29 = vrot.slane %v62_v24, %v70_v25  ;;  %v1589_v21 = vld [vmem:[%s2411_s7] sm:$0xff]  ;;  %s2159_s7 = smov 64  }
  0x37   :  { %v79_v30 = vrot.slane %v62_v24, %v78_v26  ;;  %v2031_v24 = vld [vmem:[#allocation2 + $0x1cc] ss:$16 sps:$4 sm:$0xff]   ;;  %1591 = vrot.lane.b32.xlu0 %v1589_v21, %s2157_s13 }
  0x39   :  { %1061 = vmatpush1.bf16.msra.mxu0 %v1915_v44  ;;  %1102 = vmatpush1.bf16.msra.mxu1 %v1918_v45 }
  0x3a   :  { %1062 = vmatprep.subr.bf16.mxu0 %v1923_v46  ;;  %1103 = vmatprep.subr.bf16.mxu1 %v1926_v47 }
  0x3d   :  { %1063 = vmatpush1.bf16.msra.mxu0 %v1921_v48  ;;  %1104 = vmatpush1.bf16.msra.mxu1 %v1924_v49 }
  0x3e   :  { %1064 = vmatprep.subr.bf16.mxu0 %v1929_v50  ;;  %1105 = vmatprep.subr.bf16.mxu1 %v1932_v51  ;;  %v1975_v50 = vld [vmem:[#allocation2 + $0xe8] ss:$16 sps:$4 sm:$0xff]  }
  0x3f   :  { %v1978_v51 = vld [vmem:[#allocation2 + $0x2e8] ss:$16 sps:$4 sm:$0xff]  }
  0x41   :  { %1065 = vmatpush2.bf16.msra.mxu0 %v1927_v52  ;;  %1106 = vmatpush2.bf16.msra.mxu1 %v1930_v53  ;;  %v1983_v53 = vld [vmem:[#allocation2 + $0xcc] ss:$16 sps:$4 sm:$0xff]  }
  0x42   :  { %1066 = vmatprep.subr.bf16.mxu0 %v1935_v54  ;;  %1107 = vmatprep.subr.bf16.mxu1 %v1938_v55  ;;  %v1986_v54 = vld [vmem:[#allocation2 + $0x2cc] ss:$16 sps:$4 sm:$0xff]   ;;  %v1981_v55 = vld [vmem:[#allocation2 + $0xc8] ss:$16 sps:$4 sm:$0xff]  }
  0x45   :  { %1067 = vmatpush2.bf16.msra.mxu0 %v1933_v56  ;;  %1108 = vmatpush2.bf16.msra.mxu1 %v1936_v57  ;;  %v1984_v56 = vld [vmem:[#allocation2 + $0x2c8] ss:$16 sps:$4 sm:$0xff]   ;;  %v1989_v57 = vld [vmem:[#allocation2 + $0xac] ss:$16 sps:$4 sm:$0xff]  }
  0x46   :  { %1068 = vmatprep.subr.bf16.mxu0 %v1941_v58  ;;  %1109 = vmatprep.subr.bf16.mxu1 %v1944_v59  ;;  %v1992_v58 = vld [vmem:[#allocation2 + $0x2ac] ss:$16 sps:$4 sm:$0xff]   ;;  %v1987_v59 = vld [vmem:[#allocation2 + $0xa8] ss:$16 sps:$4 sm:$0xff]  }
  0x49   :  { %1069 = vmatpush2.bf16.msra.mxu0 %v1939_v60  ;;  %1110 = vmatpush2.bf16.msra.mxu1 %v1942_v61  ;;  %v1990_v60 = vld [vmem:[#allocation2 + $0x2a8] ss:$16 sps:$4 sm:$0xff]   ;;  %v1995_v61 = vld [vmem:[#allocation2 + $0x8c] ss:$16 sps:$4 sm:$0xff]  }
  0x4a   :  { %1070 = vmatprep.subr.bf16.mxu0 %v1947_v62  ;;  %1111 = vmatprep.subr.bf16.mxu1 %v1950_v63  ;;  %v1998_v62 = vld [vmem:[#allocation2 + $0x28c] ss:$16 sps:$4 sm:$0xff]   ;;  %v1993_v63 = vld [vmem:[#allocation2 + $0x88] ss:$16 sps:$4 sm:$0xff]  }
  0x4d   :  { %1071 = vmatpush2.bf16.msra.mxu0 %v1945_v0  ;;  %1112 = vmatpush2.bf16.msra.mxu1 %v1948_v1  ;;  %v1996_v0 = vld [vmem:[#allocation2 + $0x288] ss:$16 sps:$4 sm:$0xff]   ;;  %v2001_v1 = vld [vmem:[#allocation2 + $0x6c] ss:$16 sps:$4 sm:$0xff]  }
  0x4e   :  { %1072 = vmatprep.subr.bf16.mxu0 %v1953_v2  ;;  %1113 = vmatprep.subr.bf16.mxu1 %v1956_v3  ;;  %v2004_v2 = vld [vmem:[#allocation2 + $0x26c] ss:$16 sps:$4 sm:$0xff]   ;;  %v1999_v3 = vld [vmem:[#allocation2 + $0x68] ss:$16 sps:$4 sm:$0xff]  }
  0x51   :  { %1073 = vmatpush2.bf16.msra.mxu0 %v1951_v4  ;;  %1114 = vmatpush2.bf16.msra.mxu1 %v1954_v5  ;;  %v2002_v4 = vld [vmem:[#allocation2 + $0x268] ss:$16 sps:$4 sm:$0xff]   ;;  %v2007_v5 = vld [vmem:[#allocation2 + $0x4c] ss:$16 sps:$4 sm:$0xff]  }
  0x52   :  { %1074 = vmatprep.subr.bf16.mxu0 %v1959_v6  ;;  %1115 = vmatprep.subr.bf16.mxu1 %v1962_v7  ;;  %v2010_v6 = vld [vmem:[#allocation2 + $0x24c] ss:$16 sps:$4 sm:$0xff]   ;;  %v2005_v7 = vld [vmem:[#allocation2 + $0x48] ss:$16 sps:$4 sm:$0xff]  }
  0x55   :  { %1075 = vmatpush2.bf16.msra.mxu0 %v1957_v8  ;;  %1116 = vmatpush2.bf16.msra.mxu1 %v1960_v9  ;;  %v2008_v8 = vld [vmem:[#allocation2 + $0x248] ss:$16 sps:$4 sm:$0xff]   ;;  %v2013_v9 = vld [vmem:[#allocation2 + $0x2c] ss:$16 sps:$4 sm:$0xff]  }
  0x56   :  { %1076 = vmatprep.subr.bf16.mxu0 %v1965_v10  ;;  %1117 = vmatprep.subr.bf16.mxu1 %v1968_v11  ;;  %v2016_v10 = vld [vmem:[#allocation2 + $0x22c] ss:$16 sps:$4 sm:$0xff]   ;;  %v2011_v11 = vld [vmem:[#allocation2 + $0x28] ss:$16 sps:$4 sm:$0xff]  }
  0x59   :  { %1077 = vmatpush2.bf16.msra.mxu0 %v1963_v12  ;;  %1118 = vmatpush2.bf16.msra.mxu1 %v1966_v13  ;;  %v2014_v12 = vld [vmem:[#allocation2 + $0x228] ss:$16 sps:$4 sm:$0xff]   ;;  %v2019_v13 = vld [vmem:[#allocation2 + $0xc] ss:$16 sps:$4 sm:$0xff]  }
  0x5a   :  { %1078 = vmatprep.subr.bf16.mxu0 %v1971_v14  ;;  %1119 = vmatprep.subr.bf16.mxu1 %v1974_v15  ;;  %v2022_v14 = vld [vmem:[#allocation2 + $0x20c] ss:$16 sps:$4 sm:$0xff]   ;;  %v2017_v15 = vld [vmem:[#allocation2 + $0x8] ss:$16 sps:$4 sm:$0xff]  }
  0x5d   :  { %1079 = vmatpush2.bf16.msra.mxu0 %v1969_v16  ;;  %1120 = vmatpush2.bf16.msra.mxu1 %v1972_v17  ;;  %v2020_v16 = vld [vmem:[#allocation2 + $0x208] ss:$16 sps:$4 sm:$0xff]   ;;  %v2025_v17 = vld [vmem:[#allocation2 + $0x1ec] ss:$16 sps:$4 sm:$0xff]  }
  0x5e   :  { %1130 = vmatprep.subr.bf16.mxu0 %v1977_v18  ;;  %1171 = vmatprep.subr.bf16.mxu1 %v1980_v19  ;;  %v2028_v18 = vld [vmem:[#allocation2 + $0x3ec] ss:$16 sps:$4 sm:$0xff]   ;;  %v2023_v19 = vld [vmem:[#allocation2 + $0x1e8] ss:$16 sps:$4 sm:$0xff]  }
  0xe0   :  { %v202_v31 = vpop.f32.mrf.mxu0  ;;  %v243_v32 = vpop.f32.mrf.mxu1 }
  0xe1   :  { %v203_v33 = vadd.f32 %v202_v31, %v67_v27  ;;  %v244_v34 = vadd.f32 %v243_v32, %v75_v28  ;;  %v2034_v27 = vld [vmem:[#allocation2 + $0x3cc] ss:$16 sps:$4 sm:$0xff]   ;;  %v2029_v28 = vld [vmem:[#allocation2 + $0x1c8] ss:$16 sps:$4 sm:$0xff]  }
  0xe2   :  { %v204_v35 = vpop.f32.mrf.mxu0  ;;  %v245_v36 = vpop.f32.mrf.mxu1  ;;  %v2040_v31 = vld [vmem:[#allocation2 + $0x3ac] ss:$16 sps:$4 sm:$0xff]   ;;  %v2035_v32 = vld [vmem:[#allocation2 + $0x1a8] ss:$16 sps:$4 sm:$0xff]  }
  0xe3   :  { %v252_v37 = vmax.f32 %v244_v34, 0.0  ;;  %v205_v38 = vadd.f32 %v204_v35, %v71_v29  ;;  %v246_v39 = vadd.f32 %v245_v36, %v79_v30  ;;  %v250_v40 = vmax.f32 %v203_v33, 0.0  ;;  %v2032_v29 = vld [vmem:[#allocation2 + $0x3c8] ss:$16 sps:$4 sm:$0xff]   ;;  %v2037_v30 = vld [vmem:[#allocation2 + $0x1ac] ss:$16 sps:$4 sm:$0xff]  }
  0xe4   :  { %v206_v41 = vpop.f32.mrf.mxu0  ;;  %v247_v42 = vpop.f32.mrf.mxu1  ;;  %v2038_v33 = vld [vmem:[#allocation2 + $0x3a8] ss:$16 sps:$4 sm:$0xff]   ;;  %v2043_v34 = vld [vmem:[#allocation2 + $0x18c] ss:$16 sps:$4 sm:$0xff]  }
  0xe5   :  { %v251_v43 = vmax.f32 %v205_v38, 0.0  ;;  %v253_v44 = vmax.f32 %v246_v39, 0.0  ;;  %v2279_v45 = vpack.c.bf16 %v252_v37, %v252_v37  ;;  %v2281_v52 = vpack.c.bf16 %v250_v40, %v250_v40  ;;  %v2046_v35 = vld [vmem:[#allocation2 + $0x38c] ss:$16 sps:$4 sm:$0xff]   ;;  %v2041_v36 = vld [vmem:[#allocation2 + $0x188] ss:$16 sps:$4 sm:$0xff]  }
  0xe6   :  { %v207_v46 = vpop.f32.mrf.mxu0  ;;  %v248_v47 = vpop.f32.mrf.mxu1  ;;  %v2044_v37 = vld [vmem:[#allocation2 + $0x388] ss:$16 sps:$4 sm:$0xff]   ;;  %v2049_v38 = vld [vmem:[#allocation2 + $0x16c] ss:$16 sps:$4 sm:$0xff]  }
  0xe7   :  { %v255_v48 = vpack.c.bf16 %v251_v43, %v251_v43  ;;  %v257_v49 = vpack.c.bf16 %v253_v44, %v253_v44  ;;  %v2052_v39 = vld [vmem:[#allocation2 + $0x36c] ss:$16 sps:$4 sm:$0xff]   ;;  %v2047_v40 = vld [vmem:[#allocation2 + $0x168] ss:$16 sps:$4 sm:$0xff]  }
  0xe8   :  { %v2050_v41 = vld [vmem:[#allocation2 + $0x368] ss:$16 sps:$4 sm:$0xff]   ;;  %v2055_v42 = vld [vmem:[#allocation2 + $0x14c] ss:$16 sps:$4 sm:$0xff]  }
  0xe9   :  { %1080 = vmatprep.mubr.bf16.mxu0 %v255_v48  ;;  %1121 = vmatprep.mubr.bf16.mxu1 %v257_v49  ;;  %v2058_v43 = vld [vmem:[#allocation2 + $0x34c] ss:$16 sps:$4 sm:$0xff]   ;;  %v2053_v44 = vld [vmem:[#allocation2 + $0x148] ss:$16 sps:$4 sm:$0xff]  }
  0xea   :  { %1081 = vmatmul.mubr.bf16.vlgmr.msra.gmra.mxu0 %v2281_v52  ;;  %1122 = vmatmul.mubr.bf16.vlgmr.msra.gmra.mxu1 %v2279_v45  ;;  %v2056_v46 = vld [vmem:[#allocation2 + $0x348] ss:$16 sps:$4 sm:$0xff]   ;;  %v2061_v47 = vld [vmem:[#allocation2 + $0x12c] ss:$16 sps:$4 sm:$0xff]  }
  0xeb   :  { %1131 = vmatpush1.bf16.msra.mxu0 %v1975_v50  ;;  %1172 = vmatpush1.bf16.msra.mxu1 %v1978_v51  ;;  %v2062_v50 = vld [vmem:[#allocation2 + $0x328] ss:$16 sps:$4 sm:$0xff]   ;;  %v2067_v51 = vld [vmem:[#allocation2 + $0x10c] ss:$16 sps:$4 sm:$0xff]  }
  0xec   :  { %1162 = vmatprep.mubr.bf16.mxu0 %v255_v48  ;;  %1203 = vmatprep.mubr.bf16.mxu1 %v257_v49  ;;  %v2064_v48 = vld [vmem:[#allocation2 + $0x32c] ss:$16 sps:$4 sm:$0xff]   ;;  %v2059_v49 = vld [vmem:[#allocation2 + $0x128] ss:$16 sps:$4 sm:$0xff]  }
  0xed   :  { %1132 = vmatprep.subr.bf16.mxu0 %v1983_v53  ;;  %1173 = vmatprep.subr.bf16.mxu1 %v1986_v54  ;;  %v2070_v53 = vld [vmem:[#allocation2 + $0x30c] ss:$16 sps:$4 sm:$0xff]   ;;  %v2065_v54 = vld [vmem:[#allocation2 + $0x108] ss:$16 sps:$4 sm:$0xff]  }
  0xef   :  { %1133 = vmatpush1.bf16.msra.mxu0 %v1981_v55  ;;  %1174 = vmatpush1.bf16.msra.mxu1 %v1984_v56  ;;  %v2068_v55 = vld [vmem:[#allocation2 + $0x308] ss:$16 sps:$4 sm:$0xff]  }
  0xf0   :  { %1134 = vmatprep.subr.bf16.mxu0 %v1989_v57  ;;  %1175 = vmatprep.subr.bf16.mxu1 %v1992_v58  ;;  %v2071_v56 = vld [vmem:[%s2409_s5 + $0x78] sm:$0xff]   ;;  %v2073_v58 = vld [vmem:[%s2409_s5 + $0x70] sm:$0xff]  }
  0xf1   :  { %v2072_v57 = vld [vmem:[%s2409_s5 + $0x38] sm:$0xff]  }
  0xf3   :  { %1135 = vmatpush1.bf16.msra.mxu0 %v1987_v59  ;;  %1176 = vmatpush1.bf16.msra.mxu1 %v1990_v60  ;;  %v2074_v59 = vld [vmem:[%s2409_s5 + $0x30] sm:$0xff]   ;;  %v2075_v60 = vld [vmem:[%s2409_s5 + $0x68] sm:$0xff]  }
  0xf4   :  { %1136 = vmatprep.subr.bf16.mxu0 %v1995_v61  ;;  %1177 = vmatprep.subr.bf16.mxu1 %v1998_v62  ;;  %v2076_v61 = vld [vmem:[%s2409_s5 + $0x28] sm:$0xff]   ;;  %v2079_v62 = vld [vmem:[%s2409_s5 + $0x58] sm:$0xff]  }
  0xf7   :  { %1137 = vmatpush1.bf16.msra.mxu0 %v1993_v63  ;;  %1178 = vmatpush1.bf16.msra.mxu1 %v1996_v0  ;;  %v2087_v63 = vld [vmem:[%s2409_s5 + $0xf8] sm:$0xff]  }
  0xf8   :  { %1138 = vmatprep.subr.bf16.mxu0 %v2001_v1  ;;  %1179 = vmatprep.subr.bf16.mxu1 %v2004_v2  ;;  %v2088_v0 = vld [vmem:[%s2409_s5 + $0xb8] sm:$0xff]   ;;  %v2089_v1 = vld [vmem:[%s2409_s5 + $0xf0] sm:$0xff]  }
  0xf9   :  { %v2080_v2 = vld [vmem:[%s2409_s5 + $0x18] sm:$0xff]  }
  0xfb   :  { %1139 = vmatpush1.bf16.msra.mxu0 %v1999_v3  ;;  %1180 = vmatpush1.bf16.msra.mxu1 %v2002_v4  ;;  %v2081_v3 = vld [vmem:[%s2409_s5 + $0x50] sm:$0xff]  }
  0xfc   :  { %1140 = vmatprep.subr.bf16.mxu0 %v2007_v5  ;;  %1181 = vmatprep.subr.bf16.mxu1 %v2010_v6  ;;  %v2090_v4 = vld [vmem:[%s2409_s5 + $0xb0] sm:$0xff]   ;;  %v2091_v5 = vld [vmem:[%s2409_s5 + $0xe8] sm:$0xff]  }
  0xfd   :  { %v2082_v6 = vld [vmem:[%s2409_s5 + $0x10] sm:$0xff]  }
  0xff   :  { %1141 = vmatpush1.bf16.msra.mxu0 %v2005_v7  ;;  %1182 = vmatpush1.bf16.msra.mxu1 %v2008_v8  ;;  %v2083_v7 = vld [vmem:[%s2409_s5 + $0x48] sm:$0xff]  }
 0x100   :  { %1142 = vmatprep.subr.bf16.mxu0 %v2013_v9  ;;  %1183 = vmatprep.subr.bf16.mxu1 %v2016_v10  ;;  %v2092_v8 = vld [vmem:[%s2409_s5 + $0xa8] sm:$0xff]   ;;  %v2093_v9 = vld [vmem:[%s2409_s5 + $0xe0] sm:$0xff]  }
 0x101   :  { %v2084_v10 = vld [vmem:[%s2409_s5 + $0x8] sm:$0xff]  }
 0x103   :  { %1143 = vmatpush1.bf16.msra.mxu0 %v2011_v11  ;;  %1184 = vmatpush1.bf16.msra.mxu1 %v2014_v12  ;;  %v2085_v11 = vld [vmem:[%s2409_s5 + $0x40] sm:$0xff]  }
 0x104   :  { %1144 = vmatprep.subr.bf16.mxu0 %v2019_v13  ;;  %1185 = vmatprep.subr.bf16.mxu1 %v2022_v14  ;;  %v2094_v12 = vld [vmem:[%s2409_s5 + $0xa0] sm:$0xff]   ;;  %v2095_v13 = vld [vmem:[%s2409_s5 + $0xd8] sm:$0xff]  }
 0x105   :  { %v2086_v14 = vld [vmem:[%s2409_s5] sm:$0xff]  }
 0x107   :  { %1145 = vmatpush1.bf16.msra.mxu0 %v2017_v15  ;;  %1186 = vmatpush1.bf16.msra.mxu1 %v2020_v16  ;;  %v2096_v15 = vld [vmem:[%s2409_s5 + $0x98] sm:$0xff]   ;;  %v2097_v16 = vld [vmem:[%s2409_s5 + $0xd0] sm:$0xff]  }
 0x108   :  { %1146 = vmatprep.subr.bf16.mxu0 %v2025_v17  ;;  %1187 = vmatprep.subr.bf16.mxu1 %v2028_v18  ;;  %v2098_v17 = vld [vmem:[%s2409_s5 + $0x90] sm:$0xff]   ;;  %v2099_v18 = vld [vmem:[%s2409_s5 + $0xc8] sm:$0xff]  }
 0x10b   :  { %1147 = vmatpush2.bf16.msra.mxu0 %v2023_v19  ;;  %1188 = vmatpush2.bf16.msra.mxu1 %v2026_v20  ;;  %v2100_v19 = vld [vmem:[%s2409_s5 + $0x88] sm:$0xff]   ;;  %v2101_v20 = vld [vmem:[%s2409_s5 + $0xc0] sm:$0xff]  }
 0x10c   :  { %1148 = vmatprep.subr.bf16.mxu0 %v2031_v24  ;;  %1189 = vmatprep.subr.bf16.mxu1 %v2034_v27  ;;  %v2102_v24 = vld [vmem:[%s2409_s5 + $0x80] sm:$0xff]  }
 0x10d   :  { %v386_v27 = vld [vmem:[%s2408_s4] sm:$0xf] }
 0x10f   :  { %1149 = vmatpush2.bf16.msra.mxu0 %v2029_v28  ;;  %1190 = vmatpush2.bf16.msra.mxu1 %v2032_v29  ;;  %v391_v28 = vrot.slane %v386_v27, %v66_v22  ;;  %v395_v29 = vrot.slane %v386_v27, %v70_v25  ;;  %v399_v22 = vrot.slane %v386_v27, %v74_v23 }
 0x110   :  { %1150 = vmatprep.subr.bf16.mxu0 %v2037_v30  ;;  %1191 = vmatprep.subr.bf16.mxu1 %v2040_v31  ;;  %v403_v25 = vrot.slane %v386_v27, %v78_v26 }
 0x113   :  { %1151 = vmatpush2.bf16.msra.mxu0 %v2035_v32  ;;  %1192 = vmatpush2.bf16.msra.mxu1 %v2038_v33 }
 0x114   :  { %1152 = vmatprep.subr.bf16.mxu0 %v2043_v34  ;;  %1193 = vmatprep.subr.bf16.mxu1 %v2046_v35 }
 0x117   :  { %1153 = vmatpush2.bf16.msra.mxu0 %v2041_v36  ;;  %1194 = vmatpush2.bf16.msra.mxu1 %v2044_v37 }
 0x118   :  { %1154 = vmatprep.subr.bf16.mxu0 %v2049_v38  ;;  %1195 = vmatprep.subr.bf16.mxu1 %v2052_v39 }
 0x11b   :  { %1155 = vmatpush2.bf16.msra.mxu0 %v2047_v40  ;;  %1196 = vmatpush2.bf16.msra.mxu1 %v2050_v41 }
 0x11c   :  { %1156 = vmatprep.subr.bf16.mxu0 %v2055_v42  ;;  %1197 = vmatprep.subr.bf16.mxu1 %v2058_v43 }
 0x11f   :  { %1157 = vmatpush2.bf16.msra.mxu0 %v2053_v44  ;;  %1198 = vmatpush2.bf16.msra.mxu1 %v2056_v46 }
 0x120   :  { %1158 = vmatprep.subr.bf16.mxu0 %v2061_v47  ;;  %1199 = vmatprep.subr.bf16.mxu1 %v2064_v48 }
 0x123   :  { %1159 = vmatpush2.bf16.msra.mxu0 %v2059_v49  ;;  %1200 = vmatpush2.bf16.msra.mxu1 %v2062_v50 }
 0x124   :  { %1160 = vmatprep.subr.bf16.mxu0 %v2067_v51  ;;  %1201 = vmatprep.subr.bf16.mxu1 %v2070_v53 }
 0x127   :  { %1161 = vmatpush2.bf16.msra.mxu0 %v2065_v54  ;;  %1202 = vmatpush2.bf16.msra.mxu1 %v2068_v55 }
 0x128   :  { %1803 = vmatprep.subr.bf16.mxu0 %v2071_v56  ;;  %1825 = vmatprep.subr.bf16.mxu1 %v2087_v63 }
 0x12a   :  { %1163 = vmatmul.mubr.bf16.vlgmr.msra.gmra.mxu0 %v2281_v52  ;;  %1204 = vmatmul.mubr.bf16.vlgmr.msra.gmra.mxu1 %v2279_v45  ;;  %v2077_v45 = vld [vmem:[%s2409_s5 + $0x60] sm:$0xff]  }
 0x12b   :  { %1804 = vmatpush3.bf16.msra.mxu0 %v2072_v57  ;;  %v2078_v52 = vld [vmem:[%s2409_s5 + $0x20] sm:$0xff]   ;;  %1826 = vmatpush3.bf16.msra.mxu1 %v2088_v0 }
 0x12c   :  { %1805 = vmatprep.subr.bf16.mxu0 %v2073_v58  ;;  %1827 = vmatprep.subr.bf16.mxu1 %v2089_v1  ;;  %v1770_v1 = vld [vmem:[%s2410_s6] ss:$0 sm:$0xff]  ;;  %s2158_s6 = smov 96  }
 0x12f   :  { %1806 = vmatpush3.bf16.msra.mxu0 %v2074_v59  ;;  %1828 = vmatpush3.bf16.msra.mxu1 %v2090_v4 }
 0x130   :  { %1807 = vmatprep.subr.bf16.mxu0 %v2075_v60  ;;  %1829 = vmatprep.subr.bf16.mxu1 %v2091_v5 }
 0x133   :  { %1808 = vmatpush3.bf16.msra.mxu0 %v2076_v61  ;;  %1830 = vmatpush3.bf16.msra.mxu1 %v2092_v8 }
 0x134   :  { %1809 = vmatprep.subr.bf16.mxu0 %v2077_v45  ;;  %1831 = vmatprep.subr.bf16.mxu1 %v2093_v9 }
 0x137   :  { %1810 = vmatpush3.bf16.msra.mxu0 %v2078_v52  ;;  %1832 = vmatpush3.bf16.msra.mxu1 %v2094_v12 }
 0x138   :  { %1811 = vmatprep.subr.bf16.mxu0 %v2079_v62  ;;  %1833 = vmatprep.subr.bf16.mxu1 %v2095_v13 }
 0x13b   :  { %1812 = vmatpush3.bf16.msra.mxu0 %v2080_v2  ;;  %1834 = vmatpush3.bf16.msra.mxu1 %v2096_v15 }
 0x13c   :  { %1813 = vmatprep.subr.bf16.mxu0 %v2081_v3  ;;  %1835 = vmatprep.subr.bf16.mxu1 %v2097_v16 }
 0x13f   :  { %1814 = vmatpush3.bf16.msra.mxu0 %v2082_v6  ;;  %1836 = vmatpush3.bf16.msra.mxu1 %v2098_v17 }
 0x140   :  { %1815 = vmatprep.subr.bf16.mxu0 %v2083_v7  ;;  %1837 = vmatprep.subr.bf16.mxu1 %v2099_v18 }
 0x143   :  { %1816 = vmatpush3.bf16.msra.mxu0 %v2084_v10  ;;  %1838 = vmatpush3.bf16.msra.mxu1 %v2100_v19 }
 0x144   :  { %1817 = vmatprep.subr.bf16.mxu0 %v2085_v11  ;;  %1839 = vmatprep.subr.bf16.mxu1 %v2101_v20 }
 0x147   :  { %1818 = vmatpush3.bf16.msra.mxu0 %v2086_v14  ;;  %1840 = vmatpush3.bf16.msra.mxu1 %v2102_v24 }
 0x1aa   :  { %v1082_v30 = vpop.f32.mrf.mxu0  ;;  %v1123_v31 = vpop.f32.mrf.mxu1 }
 0x1ab   :  { %v1083_v32 = vadd.f32 %v1082_v30, %v391_v28 }
 0x1ac   :  { %v1084_v33 = vpop.f32.mrf.mxu0  ;;  %v1125_v34 = vpop.f32.mrf.mxu1 }
 0x1ad   :  { %v1124_v35 = vadd.f32 %v1123_v31, %v1083_v32  ;;  %v1085_v36 = vadd.f32 %v1084_v33, %v395_v29  ;;  %v1592_v32 = vpop.permute.xlu0 %1591 }
 0x1ae   :  { %v1086_v37 = vpop.f32.mrf.mxu0  ;;  %v1127_v38 = vpop.f32.mrf.mxu1 }
 0x1af   :  { %v1126_v39 = vadd.f32 %v1125_v34, %v1085_v36  ;;  %v1212_v40 = vmax.f32 %v1124_v35, 0.0 }
 0x1b0   :  { %v1087_v41 = vpop.f32.mrf.mxu0  ;;  %v1128_v42 = vpop.f32.mrf.mxu1 }
 0x1b1   :  { %v1213_v43 = vmax.f32 %v1126_v39, 0.0  ;;  %v1216_v46 = vpack.c.bf16 %v1212_v40, %v1212_v40 }
 0x1b3   :  { %v1217_v44 = vpack.c.bf16 %v1213_v43, %v1213_v43 }
 0x1b5   :  { %1515 = vmatprep.mubr.bf16.mxu0 %v1217_v44 }
 0x1b6   :  { %1516 = vmatmul.mubr.bf16.vlgmr.msra.gmra.mxu0 %v1216_v46 }
 0x1ea   :  { %v1164_v47 = vpop.f32.mrf.mxu0  ;;  %v1205_v48 = vpop.f32.mrf.mxu1 }
 0x1eb   :  { %v1165_v49 = vadd.f32 %v1164_v47, %v399_v22 }
 0x1ec   :  { %v1166_v50 = vpop.f32.mrf.mxu0  ;;  %v1207_v51 = vpop.f32.mrf.mxu1 }
 0x1ed   :  { %v1206_v53 = vadd.f32 %v1205_v48, %v1165_v49  ;;  %v1167_v54 = vadd.f32 %v1166_v50, %v403_v25 }
 0x1ee   :  { %v1168_v55 = vpop.f32.mrf.mxu0  ;;  %v1209_v56 = vpop.f32.mrf.mxu1 }
 0x1ef   :  { %v1208_v57 = vadd.f32 %v1207_v51, %v1167_v54  ;;  %v1214_v58 = vmax.f32 %v1206_v53, 0.0 }
 0x1f0   :  { %v1169_v59 = vpop.f32.mrf.mxu0  ;;  %v1210_v60 = vpop.f32.mrf.mxu1 }
 0x1f1   :  { %v1215_v61 = vmax.f32 %v1208_v57, 0.0  ;;  %v1218_v52 = vpack.c.bf16 %v1214_v58, %v1214_v58 }
 0x1f3   :  { %v1219_v45 = vpack.c.bf16 %v1215_v61, %v1215_v61 }
 0x1f5   :  { %1555 = vmatprep.mubr.bf16.mxu1 %v1219_v45 }
 0x1f6   :  { %1556 = vmatmul.mubr.bf16.vlgmr.msra.gmra.mxu1 %v1218_v52 }
 0x276   :  { %v1819_v23 = vpop.f32.mrf.mxu0 }
 0x278   :  { %v1820_v26 = vpop.f32.mrf.mxu0 }
 0x279   :  { %v1821_v0 = vadd.f32 %v1820_v26, %v1819_v23 }
 0x27a   :  { %v1822_v62 = vpop.f32.mrf.mxu0 }
 0x27b   :  { %v1518_v4 = vadd.f32 %v1821_v0, %v1770_v1 }
 0x27c   :  { %v1823_v63 = vpop.f32.mrf.mxu0 }
 0x2b6   :  { %v1841_v2 = vpop.f32.mrf.mxu1 }
 0x2b8   :  { %v1842_v3 = vpop.f32.mrf.mxu1 }
 0x2b9   :  { %v1843_v5 = vadd.f32 %v1842_v3, %v1841_v2 }
 0x2ba   :  { %v1844_v6 = vpop.f32.mrf.mxu1 }
 0x2bb   :  { %v1558_v7 = vadd.f32 %v1843_v5, %v1518_v4 }
 0x2bc   :  { %v1845_v8 = vpop.f32.mrf.mxu1 }
 0x2bd   :  { %v1566_v9 = vand.u32 2147483647, %v1558_v7  ;;  %v1563_v20 = vmax.f32 %v1558_v7, 0.0  ;;  %vm1564_vm2 = vcmp.ne.f32.partialorder %v1558_v7, %v1558_v7 }
 0x2bf   :  { %v1567_v10 = vsub.f32 0.0, %v1566_v9 }
 0x2c1   :  { %v1568_v11 = vmul.f32 1.442695, %v1567_v10 }
 0x2c3   :  { %2103 = vpow2.f32 %v1568_v11 }
 0x2d0   :  { %v2104_v12 = vpop.eup %2103 }
 0x2d1   :  { %v1570_v13 = vadd.f32 1.0, %v2104_v12  ;;  %v1573_v14 = vmul.f32 -0.5, %v2104_v12  ;;  %v1576_v16 = vand.u32 2147483647, %v2104_v12 }
 0x2d3   :  { %2105 = vlog2.f32 %v1570_v13  ;;  %v1574_v15 = vadd.f32 1.0, %v1573_v14  ;;  %vm1577_vm1 = vcmp.lt.f32.partialorder %v1576_v16, 0.0004427343 }
 0x2d5   :  { %v1575_v19 = vmul.f32 %v2104_v12, %v1574_v15 }
 0x2e0   :  { %v2106_v17 = vpop.eup %2105 }
 0x2e1   :  { %v1572_v18 = vmul.f32 0.6931472, %v2106_v17 }
 0x2e3   :  { %v1578_v24 = vsel %vm1577_vm1, %v1575_v19, %v1572_v18 }
 0x2e4   :  { %v1579_v27 = vadd.f32 %v1578_v24, %v1563_v20 }
 0x2e6   :  { %v1580_v28 = vsel %vm1564_vm2, %v1558_v7, %v1579_v27 }
 0x2e7   :  { %v1581_v29 = vadd.f32 1e-08, %v1580_v28 }
 0x2e9   :  { %2107 = vrsqrt.f32 %v1581_v29  ;;  %vm1584_vm3 = vcmp.eq.f32.partialorder %v1581_v29, inf  ;;  %v1587_v33 = vand.u32 2147483648, %v1581_v29  ;;  %vm1586_vm4 = vcmp.eq.f32.partialorder %v1581_v29, 0.0 }
 0x2ea   :  { %v1605_v39 = vsel %vm1604_vm5, %v1558_v7, %v1581_v29 }
 0x2f6   :  { %v2108_v30 = vpop.eup %2107 }
 0x2f7   :  { %v1583_v31 = vmul.f32 %v2108_v30, %v1581_v29 }
 0x2f9   :  { %v1585_v34 = vsel %vm1584_vm3, %v1581_v29, %v1583_v31 }
 0x2fa   :  { %v1588_v35 = vsel %vm1586_vm4, %v1587_v33, %v1585_v34 }
 0x2fb   :  { %v1594_v36 = vmul.f32 %v1592_v32, %v1588_v35 }
 0x2fd   :  { %1596 = vrot.lane.b32.xlu0 %v1594_v36, %s2158_s6 }
 0x36f   :  { %v1597_v37 = vpop.permute.xlu0 %1596 }
 0x370   :  { %v1599_v38 = vadd.f32 %v1597_v37, %v1558_v7 }
 0x372   :  { %1601 = vrot.lane.b32.xlu1 %v1599_v38, %s2159_s7 }
 0x3e4   :  { %v1602_v40 = vpop.permute.xlu1 %1601 }
 0x3e5   :  { %v1606_v41 = vsel %vm164_vm0, %v1605_v39, %v1602_v40 }
 0x3e6   :  { %1608 = vst.msk [vmem:[#allocation5] sm:$0xff] %vm1607_vm6, %v1606_v41 }
 0x3e7   :  { %2140 = shalt.err (!%p2137_p9)
}
 0x3e8   :  { %1618 = dma.vmem_to_hbm [thread:$0]  %s1616_s17, 128, %s2412_s8, [#allocation4]  }
 0x3e9   :  { %2151 = dma.done.wait [#allocation4], 128  }
 0x3ea   :  { %2152 = vsyncadd [#allocation4], 4294967168 }
 0x3eb   :  { %1622 = vsyncpa [#allocation3], 1 }
 0x3ec   :  { %1623 = vsyncpa [#allocation4], 1 }

</bundles_post_ra>
